<compile_context>
chip_gen: v6e
topology: v6e:2x2x1
jax: 0.10.0
libtpu: 0.0.40
codegen_flags: <defaults>
</compile_context>

<pallas_src>
from functools import partial

import numpy as np
import jax
import jax.numpy as jnp
from jax.experimental import pallas as pl
from jax.experimental.pallas import tpu as pltpu


def _round_up(x: int, m: int) -> int:
    return (x + m - 1) // m * m


def _pick_row_tile(n_rows: int, batch_rows: int) -> int:
    # Row tile: large enough to amortize the ~0.35 us per-grid-step overhead,
    # small enough to double-buffer under the default scoped VMEM on all of
    # v5e/v6e/v7x.  The x_s rows must fit inside the first tile.
    target = 512
    if n_rows <= target:
        tr = _round_up(n_rows, 8)
    else:
        tr = max(target, _round_up(batch_rows, 8))
    return tr


# ----------------------------- Pallas kernel ------------------------------ #
def classifier3_kernel(x_ref, w1_ref, b1_ref, wfc_ref, bfc_ref,
                       w2a_ref, b2a_ref, w2b_ref, b2b_ref,
                       fc_ref, ig_ref, *, n_s, n_s_pad):
    # mlp1: Linear -> (Dropout = identity in eval) -> ReLU
    # bf16 operands, f32 accumulation on the MXU.
    h = jnp.maximum(
        jnp.dot(x_ref[...], w1_ref[...], preferred_element_type=jnp.float32)
        + b1_ref[...], 0.0)
    h_bf = h.astype(jnp.bfloat16)

    # fc over ALL rows of the tile (x_s rows and x_r rows share one MXU pass).
    fc_ref[...] = (
        jnp.dot(h_bf, wfc_ref[...], preferred_element_type=jnp.float32)
        + bfc_ref[...])

    # mlp2 (Linear -> ReLU -> Linear) only for the x_s rows, which live at the
    # head of the first row tile.  Runs once; ig output block is grid-resident.
    @pl.when(pl.program_id(0) == 0)
    def _():
        # Sublane-aligned slice (n_s_pad is a multiple of 8); extra rows are
        # just x_r / padding rows whose mlp2 results are discarded below.
        h_s = h_bf[:n_s_pad, :]
        h2 = jnp.maximum(
            jnp.dot(h_s, w2a_ref[...], preferred_element_type=jnp.float32)
            + b2a_ref[...], 0.0)
        ig_full = (
            jnp.dot(h2.astype(jnp.bfloat16), w2b_ref[...],
                    preferred_element_type=jnp.float32)
            + b2b_ref[...])
        ig_ref[...] = ig_full[:n_s, :]


# ------------------------- jitted device forward --------------------------- #
@partial(jax.jit, static_argnames=("posthoc",))
def _device_forward(params, x_s, x_r, tau_adj, *, posthoc):
    B, S, D = x_r.shape
    H = params["w1"].shape[1]
    n_class = params["w2b"].shape[1]

    n_rows = B + B * S
    TR = _pick_row_tile(n_rows, B)
    R_pad = _round_up(n_rows, TR)
    n_s_pad = min(TR, _round_up(B, 8))

    # One lane-major row slab: [x_s ; x_r_flat ; zero padding], bf16.
    # (cast + concat + pad fuse into a single XLA op feeding the kernel.)
    x = jnp.concatenate([x_s, x_r.reshape(B * S, D)], axis=0)
    x = jnp.pad(x, ((0, R_pad - n_rows), (0, 0))).astype(jnp.bfloat16)

    bf = lambda a: a.astype(jnp.bfloat16)
    f32 = lambda a: a.astype(jnp.float32)

    kernel = partial(classifier3_kernel, n_s=B, n_s_pad=n_s_pad)

    fc_out, ig = pl.pallas_call(
        kernel,
        out_shape=(
            jax.ShapeDtypeStruct((R_pad, 2), jnp.float32),
            jax.ShapeDtypeStruct((B, n_class), jnp.float32),
        ),
        grid_spec=pltpu.PrefetchScalarGridSpec(
            num_scalar_prefetch=0,
            grid=(R_pad // TR,),
            in_specs=[
                pl.BlockSpec((TR, D), lambda i: (i, 0)),         # row slab
                pl.BlockSpec((D, H), lambda i: (0, 0)),          # w1 (resident)
                pl.BlockSpec((1, H), lambda i: (0, 0)),          # b1
                pl.BlockSpec((H, 2), lambda i: (0, 0)),          # wfc
                pl.BlockSpec((1, 2), lambda i: (0, 0)),          # bfc
                pl.BlockSpec((H, H), lambda i: (0, 0)),          # w2a
                pl.BlockSpec((1, H), lambda i: (0, 0)),          # b2a
                pl.BlockSpec((H, n_class), lambda i: (0, 0)),    # w2b
                pl.BlockSpec((1, n_class), lambda i: (0, 0)),    # b2b
            ],
            out_specs=(
                pl.BlockSpec((TR, 2), lambda i: (i, 0)),         # fc logits
                pl.BlockSpec((B, n_class), lambda i: (0, 0)),    # logits_ig
            ),
        ),
        # Row axis must be "arbitrary": the ig output block is grid-resident
        # and only written on step 0 (so it cannot be sharded across cores).
        compiler_params=pltpu.CompilerParams(
            dimension_semantics=("arbitrary",)),
    )(x,
      bf(params["w1"]), f32(params["b1"]),
      bf(params["wfc"]), f32(params["bfc"]),
      bf(params["w2a"]), f32(params["b2a"]),
      bf(params["w2b"]), f32(params["b2b"]))

    # ---- glue (all inside this single jit: argmax / softmax / reshape) ----
    logits_p = fc_out[:B]
    logits_r_flat = fc_out[B:B + B * S]

    pred_p = jnp.argmax(logits_p, axis=1)
    score_p = jax.nn.softmax(logits_p, axis=1)[:, 1]

    # [B*S, 2] -> [B, S, 2] -> [B, 2, S]  (matches PyTorch transpose(1, 2))
    logits_r = jnp.transpose(logits_r_flat.reshape(B, S, 2), (0, 2, 1))
    pred_r_full = jnp.argmax(logits_r, axis=1)                  # [B, S]
    score_r_full = jax.nn.softmax(logits_r, axis=1)[:, 1, :]    # [B, S]

    if posthoc:
        pred_ig = jnp.argmax(ig - tau_adj, axis=1)
        logits_ig = ig
    else:
        pred_ig = jnp.argmax(ig, axis=1)
        logits_ig = ig + tau_adj

    return {
        "logits": logits_r,
        "logits_p": logits_p,
        "prediction_p": pred_p,
        "score_p": score_p,
        "logits_ig": logits_ig,
        "prediction_ig": pred_ig,
        "_pred_r_full": pred_r_full,
        "_score_r_full": score_r_full,
    }


# ------------------------------- wrapper ----------------------------------- #
def classifier3_forward(params, x_s, x_r, mask_np, *,
                        tau, adjustment, posthoc=False):
    n_class = params["w2b"].shape[1]
    tau_adj = (tau * adjustment).reshape(1, n_class).astype(jnp.float32)

    d = _device_forward(params, x_s, x_r, tau_adj, posthoc=posthoc)

    # TODO(synk): `[~mask]` boolean indexing yields a dynamic shape; done on
    # host AFTER all device work completes (single device->host transfer).
    keep = ~np.asarray(mask_np)
    pred_r_full = np.asarray(d.pop("_pred_r_full"))
    score_r_full = np.asarray(d.pop("_score_r_full"))
    d["prediction_r"] = pred_r_full[keep]
    d["score_r"] = score_r_full[keep]
    return d


# --------------------------- parameter init -------------------------------- #
def init_params(key, d_in, hidden, n_class):
    ks = jax.random.split(key, 8)

    def linear(kw, kb, fan_in, fan_out):
        bound = 1.0 / np.sqrt(fan_in)
        w = jax.random.uniform(kw, (fan_in, fan_out), jnp.float32, -bound, bound)
        b = jax.random.uniform(kb, (1, fan_out), jnp.float32, -bound, bound)
        return w, b

    w1, b1 = linear(ks[0], ks[1], d_in, hidden)        # mlp1 LazyLinear
    wfc, bfc = linear(ks[2], ks[3], hidden, 2)         # fc
    w2a, b2a = linear(ks[4], ks[5], hidden, hidden)    # mlp2 linear 1
    w2b, b2b = linear(ks[6], ks[7], hidden, n_class)   # mlp2 linear 2
    return dict(w1=w1, b1=b1, wfc=wfc, bfc=bfc,
                w2a=w2a, b2a=b2a, w2b=w2b, b2b=b2b)


# -------------------- pure-JAX reference (bf16-matched) --------------------- #
def reference_fc_ig(params, x_all, n_s):
    bf = lambda a: a.astype(jnp.bfloat16)
    f32 = jnp.float32
    h = jnp.maximum(
        jnp.dot(bf(x_all), bf(params["w1"]), preferred_element_type=f32)
        + params["b1"], 0.0)
    hb = h.astype(jnp.bfloat16)
    fc = jnp.dot(hb, bf(params["wfc"]), preferred_element_type=f32) + params["bfc"]
    h2 = jnp.maximum(
        jnp.dot(hb[:n_s], bf(params["w2a"]), preferred_element_type=f32)
        + params["b2a"], 0.0)
    ig = jnp.dot(h2.astype(jnp.bfloat16), bf(params["w2b"]),
                 preferred_element_type=f32) + params["b2b"]
    return fc, ig


if __name__ == "__main__":
    B, S, D_IN, HIDDEN, N_CLASS = 2, 8, 32, 32, 4
    cls_num_lst = np.array([10.0, 20.0, 30.0, 40.0], dtype=np.float32)
    prior = cls_num_lst / cls_num_lst.sum()
    adjustment = jnp.asarray(np.log(prior / (1.0 - prior)))   # softmax=False branch
    tau = 1.0

    key = jax.random.PRNGKey(0)
    k_params, k_xs, k_xr, k_mask = jax.random.split(key, 4)
    params = init_params(k_params, D_IN, HIDDEN, N_CLASS)

    x_s = jax.random.normal(k_xs, (B, D_IN), jnp.float32)
    x_r = jax.random.normal(k_xr, (B, S, D_IN), jnp.float32)
    mask = np.asarray(jax.random.bernoulli(k_mask, 0.3, (B, S)))

    out = classifier3_forward(params, x_s, x_r, mask,
                              tau=tau, adjustment=adjustment, posthoc=False)
    jax.block_until_ready(out["logits"])
    jax.block_until_ready(out["logits_p"])
    jax.block_until_ready(out["logits_ig"])

    # sanity check against a bf16-matched pure-JAX reference
    tau_adj = (tau * adjustment).reshape(1, N_CLASS)
    x_all = jnp.concatenate([x_s, x_r.reshape(B * S, D_IN)], axis=0)
    ref_fc, ref_ig = reference_fc_ig(params, x_all, B)
    ref_logits_p = np.asarray(ref_fc[:B])
    ref_logits_r = np.asarray(ref_fc[B:]).reshape(B, S, 2).transpose(0, 2, 1)
    ref_logits_ig = np.asarray(ref_ig + tau_adj)

    np.testing.assert_allclose(np.asarray(out["logits_p"]), ref_logits_p,
                               rtol=1e-2, atol=1e-2)
    np.testing.assert_allclose(np.asarray(out["logits"]), ref_logits_r,
                               rtol=1e-2, atol=1e-2)
    np.testing.assert_allclose(np.asarray(out["logits_ig"]), ref_logits_ig,
                               rtol=1e-2, atol=1e-2)
    assert out["prediction_r"].shape == out["score_r"].shape

    print("KERNEL_OK")
</pallas_src>

<mosaic_0001>
module attributes {stable_mosaic.version = 11 : i64} {
  func.func @classifier3_kernel(%arg0: i32, %arg1: memref<24x32xbf16, #tpu.memory_space<vmem>>, %arg2: memref<32x32xbf16, #tpu.memory_space<vmem>>, %arg3: memref<1x32xf32, #tpu.memory_space<vmem>>, %arg4: memref<32x2xbf16, #tpu.memory_space<vmem>>, %arg5: memref<1x2xf32, #tpu.memory_space<vmem>>, %arg6: memref<32x32xbf16, #tpu.memory_space<vmem>>, %arg7: memref<1x32xf32, #tpu.memory_space<vmem>>, %arg8: memref<32x4xbf16, #tpu.memory_space<vmem>>, %arg9: memref<1x4xf32, #tpu.memory_space<vmem>>, %arg10: memref<24x2xf32, #tpu.memory_space<vmem>>, %arg11: memref<2x4xf32, #tpu.memory_space<vmem>>) attributes {dimension_semantics = [#tpu.dimension_semantics<arbitrary>], iteration_bounds = array<i64: 1>, scalar_prefetch = 0 : i64, scratch_operands = 0 : i64, tpu.core_type = #tpu.core_type<tc>, window_params = [{transform_indices = @transform_0, window_bounds = array<i64: 24, 32>}, {pipeline_mode = #tpu.pipeline_mode<synchronous>, transform_indices = @transform_1, window_bounds = array<i64: 32, 32>}, {pipeline_mode = #tpu.pipeline_mode<synchronous>, transform_indices = @transform_2, window_bounds = array<i64: 1, 32>}, {pipeline_mode = #tpu.pipeline_mode<synchronous>, transform_indices = @transform_3, window_bounds = array<i64: 32, 2>}, {pipeline_mode = #tpu.pipeline_mode<synchronous>, transform_indices = @transform_4, window_bounds = array<i64: 1, 2>}, {pipeline_mode = #tpu.pipeline_mode<synchronous>, transform_indices = @transform_5, window_bounds = array<i64: 32, 32>}, {pipeline_mode = #tpu.pipeline_mode<synchronous>, transform_indices = @transform_6, window_bounds = array<i64: 1, 32>}, {pipeline_mode = #tpu.pipeline_mode<synchronous>, transform_indices = @transform_7, window_bounds = array<i64: 32, 4>}, {pipeline_mode = #tpu.pipeline_mode<synchronous>, transform_indices = @transform_8, window_bounds = array<i64: 1, 4>}, {transform_indices = @transform_9, window_bounds = array<i64: 24, 2>}, {pipeline_mode = #tpu.pipeline_mode<synchronous>, transform_indices = @transform_10, window_bounds = array<i64: 2, 4>}]} {
    %c0 = arith.constant 0 : index
    %c0_0 = arith.constant 0 : index
    %0 = vector.load %arg1[%c0, %c0_0] : memref<24x32xbf16, #tpu.memory_space<vmem>>, vector<24x32xbf16>
    %c0_1 = arith.constant 0 : index
    %c0_2 = arith.constant 0 : index
    %1 = vector.load %arg2[%c0_1, %c0_2] : memref<32x32xbf16, #tpu.memory_space<vmem>>, vector<32x32xbf16>
    %cst = arith.constant dense<0.000000e+00> : vector<24x32xf32>
    %2 = tpu.matmul %0, %1, %cst {dimension_numbers = #tpu.dot_dimension_numbers<[1], [0], [0], [1], [0, 0, 1, 1], [], []>} : vector<24x32xbf16>, vector<32x32xbf16>, vector<24x32xf32> -> vector<24x32xf32>
    %c0_3 = arith.constant 0 : index
    %c0_4 = arith.constant 0 : index
    %3 = vector.load %arg3[%c0_3, %c0_4] : memref<1x32xf32, #tpu.memory_space<vmem>>, vector<1x32xf32>
    %4 = vector.broadcast %3 : vector<1x32xf32> to vector<24x32xf32>
    %5 = arith.addf %2, %4 : vector<24x32xf32>
    %cst_5 = arith.constant 0.000000e+00 : f32
    %6 = vector.broadcast %cst_5 : f32 to vector<24x32xf32>
    %7 = arith.maximumf %5, %6 : vector<24x32xf32>
    %8 = arith.truncf %7 : vector<24x32xf32> to vector<24x32xbf16>
    %c0_6 = arith.constant 0 : index
    %c0_7 = arith.constant 0 : index
    %9 = vector.load %arg4[%c0_6, %c0_7] : memref<32x2xbf16, #tpu.memory_space<vmem>>, vector<32x2xbf16>
    %cst_8 = arith.constant dense<0.000000e+00> : vector<24x2xf32>
    %10 = tpu.matmul %8, %9, %cst_8 {dimension_numbers = #tpu.dot_dimension_numbers<[1], [0], [0], [1], [0, 0, 1, 1], [], []>} : vector<24x32xbf16>, vector<32x2xbf16>, vector<24x2xf32> -> vector<24x2xf32>
    %c0_9 = arith.constant 0 : index
    %c0_10 = arith.constant 0 : index
    %11 = vector.load %arg5[%c0_9, %c0_10] : memref<1x2xf32, #tpu.memory_space<vmem>>, vector<1x2xf32>
    %12 = vector.broadcast %11 : vector<1x2xf32> to vector<24x2xf32>
    %13 = arith.addf %10, %12 : vector<24x2xf32>
    %c0_11 = arith.constant 0 : index
    %c0_12 = arith.constant 0 : index
    %14 = vector.load %arg10[%c0_11, %c0_12] : memref<24x2xf32, #tpu.memory_space<vmem>>, vector<24x2xf32>
    tpu.vector_store %arg10[%c0_11, %c0_12], %13 {strides = array<i32>} : memref<24x2xf32, #tpu.memory_space<vmem>>, vector<24x2xf32>,
    %c0_i32 = arith.constant 0 : i32
    %15 = arith.cmpi eq, %arg0, %c0_i32 : i32
    %16 = arith.extui %15 : i1 to i32
    %c0_i32_13 = arith.constant 0 : i32
    %17 = arith.cmpi ne, %16, %c0_i32_13 : i32
    scf.if %17 {
      %18 = vector.extract_strided_slice %8 {offsets = [0, 0], sizes = [8, 32], strides = [1, 1]} : vector<24x32xbf16> to vector<8x32xbf16>
      %c0_14 = arith.constant 0 : index
      %c0_15 = arith.constant 0 : index
      %19 = vector.load %arg6[%c0_14, %c0_15] : memref<32x32xbf16, #tpu.memory_space<vmem>>, vector<32x32xbf16>
      %cst_16 = arith.constant dense<0.000000e+00> : vector<8x32xf32>
      %20 = tpu.matmul %18, %19, %cst_16 {dimension_numbers = #tpu.dot_dimension_numbers<[1], [0], [0], [1], [0, 0, 1, 1], [], []>} : vector<8x32xbf16>, vector<32x32xbf16>, vector<8x32xf32> -> vector<8x32xf32>
      %c0_17 = arith.constant 0 : index
      %c0_18 = arith.constant 0 : index
      %21 = vector.load %arg7[%c0_17, %c0_18] : memref<1x32xf32, #tpu.memory_space<vmem>>, vector<1x32xf32>
      %22 = vector.broadcast %21 : vector<1x32xf32> to vector<8x32xf32>
      %23 = arith.addf %20, %22 : vector<8x32xf32>
      %cst_19 = arith.constant 0.000000e+00 : f32
      %24 = vector.broadcast %cst_19 : f32 to vector<8x32xf32>
      %25 = arith.maximumf %23, %24 : vector<8x32xf32>
      %26 = arith.truncf %25 : vector<8x32xf32> to vector<8x32xbf16>
      %c0_20 = arith.constant 0 : index
      %c0_21 = arith.constant 0 : index
      %27 = vector.load %arg8[%c0_20, %c0_21] : memref<32x4xbf16, #tpu.memory_space<vmem>>, vector<32x4xbf16>
      %cst_22 = arith.constant dense<0.000000e+00> : vector<8x4xf32>
      %28 = tpu.matmul %26, %27, %cst_22 {dimension_numbers = #tpu.dot_dimension_numbers<[1], [0], [0], [1], [0, 0, 1, 1], [], []>} : vector<8x32xbf16>, vector<32x4xbf16>, vector<8x4xf32> -> vector<8x4xf32>
      %c0_23 = arith.constant 0 : index
      %c0_24 = arith.constant 0 : index
      %29 = vector.load %arg9[%c0_23, %c0_24] : memref<1x4xf32, #tpu.memory_space<vmem>>, vector<1x4xf32>
      %30 = vector.broadcast %29 : vector<1x4xf32> to vector<8x4xf32>
      %31 = arith.addf %28, %30 : vector<8x4xf32>
      %32 = vector.extract_strided_slice %31 {offsets = [0, 0], sizes = [2, 4], strides = [1, 1]} : vector<8x4xf32> to vector<2x4xf32>
      %c0_25 = arith.constant 0 : index
      %c0_26 = arith.constant 0 : index
      %33 = vector.load %arg11[%c0_25, %c0_26] : memref<2x4xf32, #tpu.memory_space<vmem>>, vector<2x4xf32>
      tpu.vector_store %arg11[%c0_25, %c0_26], %32 {strides = array<i32>} : memref<2x4xf32, #tpu.memory_space<vmem>>, vector<2x4xf32>,
    } else {
    }
    return
  }
  func.func @transform_0(%arg0: i32) -> (i32, i32) {
    %c0_i32 = arith.constant 0 : i32
    %c0_i32_0 = arith.constant 0 : i32
    return %arg0, %c0_i32 : i32, i32
  }
  func.func @transform_1(%arg0: i32) -> (i32, i32) {
    %c0_i32 = arith.constant 0 : i32
    %c0_i32_0 = arith.constant 0 : i32
    %c0_i32_1 = arith.constant 0 : i32
    return %c0_i32, %c0_i32_0 : i32, i32
  }
  func.func @transform_2(%arg0: i32) -> (i32, i32) {
    %c0_i32 = arith.constant 0 : i32
    %c0_i32_0 = arith.constant 0 : i32
    %c0_i32_1 = arith.constant 0 : i32
    return %c0_i32, %c0_i32_0 : i32, i32
  }
  func.func @transform_3(%arg0: i32) -> (i32, i32) {
    %c0_i32 = arith.constant 0 : i32
    %c0_i32_0 = arith.constant 0 : i32
    %c0_i32_1 = arith.constant 0 : i32
    return %c0_i32, %c0_i32_0 : i32, i32
  }
  func.func @transform_4(%arg0: i32) -> (i32, i32) {
    %c0_i32 = arith.constant 0 : i32
    %c0_i32_0 = arith.constant 0 : i32
    %c0_i32_1 = arith.constant 0 : i32
    return %c0_i32, %c0_i32_0 : i32, i32
  }
  func.func @transform_5(%arg0: i32) -> (i32, i32) {
    %c0_i32 = arith.constant 0 : i32
    %c0_i32_0 = arith.constant 0 : i32
    %c0_i32_1 = arith.constant 0 : i32
    return %c0_i32, %c0_i32_0 : i32, i32
  }
  func.func @transform_6(%arg0: i32) -> (i32, i32) {
    %c0_i32 = arith.constant 0 : i32
    %c0_i32_0 = arith.constant 0 : i32
    %c0_i32_1 = arith.constant 0 : i32
    return %c0_i32, %c0_i32_0 : i32, i32
  }
  func.func @transform_7(%arg0: i32) -> (i32, i32) {
    %c0_i32 = arith.constant 0 : i32
    %c0_i32_0 = arith.constant 0 : i32
    %c0_i32_1 = arith.constant 0 : i32
    return %c0_i32, %c0_i32_0 : i32, i32
  }
  func.func @transform_8(%arg0: i32) -> (i32, i32) {
    %c0_i32 = arith.constant 0 : i32
    %c0_i32_0 = arith.constant 0 : i32
    %c0_i32_1 = arith.constant 0 : i32
    return %c0_i32, %c0_i32_0 : i32, i32
  }
  func.func @transform_9(%arg0: i32) -> (i32, i32) {
    %c0_i32 = arith.constant 0 : i32
    %c0_i32_0 = arith.constant 0 : i32
    return %arg0, %c0_i32 : i32, i32
  }
  func.func @transform_10(%arg0: i32) -> (i32, i32) {
    %c0_i32 = arith.constant 0 : i32
    %c0_i32_0 = arith.constant 0 : i32
    %c0_i32_1 = arith.constant 0 : i32
    return %c0_i32, %c0_i32_0 : i32, i32
  }
}

</mosaic_0001>

<bundles_post_ra>
// kernel: _device_forward.1
= control target key start
LH: loop header
LB: loop body
LE: loop exit
PB: predicated region body
PF: predicated region fallthrough
CT: control target
= control target key end

     0   :  { %vm69_vm0 = vcmask 261120   ;;  %v433_v5 = vmov 0.0   ;;  %vm434_vm1 = vmmov 0   ;;  %vm206_vm2 = vcmask 15360   ;;  %s552_s1 = inlined_call_operand.vmem [shape: bf16[32,32], index: 1, kind: input, shape index: {}]   ;;  %s553_s0 = inlined_call_operand.vmem [shape: bf16[24,32], index: 0, kind: input, shape index: {}]   ;;  %s554_s5 = inlined_call_operand.vmem [shape: bf16[32,32], index: 5, kind: input, shape index: {}]   ;;  %s555_s3 = inlined_call_operand.vmem [shape: bf16[32,2], index: 3, kind: input, shape index: {}]   ;;  %s556_s7 = inlined_call_operand.vmem [shape: bf16[32,4], index: 7, kind: input, shape index: {}]   ;;  %s557_s2 = inlined_call_operand.vmem [shape: f32[1,32], index: 2, kind: input, shape index: {}]   ;;  %s558_s6 = inlined_call_operand.vmem [shape: f32[1,32], index: 6, kind: input, shape index: {}]   ;;  %s559_s4 = inlined_call_operand.vmem [shape: f32[1,2], index: 4, kind: input, shape index: {}]   ;;  %s560_s9 = inlined_call_operand.vmem [shape: f32[24,2], index: 9, kind: output, shape index: {0}]   ;;  %s561_s8 = inlined_call_operand.vmem [shape: f32[1,4], index: 8, kind: input, shape index: {}]   ;;  %s562_s10 = inlined_call_operand.vmem [shape: f32[2,4], index: 10, kind: output, shape index: {1}]  }
   0x1   :  { %v423_v0 = vld [vmem:[%s552_s1 + $0x8] sm:$0xff]   ;;  %v424_v1 = vld [vmem:[%s552_s1] sm:$0xff]   ;;  %vm345_vm3 = vcmask 25600  }
   0x2   :  { %389 = vmatprep.subr.bf16.mxu0 %v423_v0  ;;  %v425_v2 = vld [vmem:[%s553_s0] sm:$0xff]   ;;  %v426_v3 = vld [vmem:[%s553_s0 + $0x8] ss:$0 sps:$4 sm:$0xff]  }
   0x3   :  { %390 = vmatpush3.bf16.msra.mxu0 %v423_v0  ;;  %393 = vmatprep.mubr.msk.bf16.mxu0 %vm69_vm0, %v425_v2  ;;  %v427_v4 = vld [vmem:[%s554_s5 + $0x8] sm:$0xff]   ;;  %v429_v7 = vld [vmem:[%s554_s5] sm:$0xff]  }
   0x4   :  { %391 = vmatprep.subr.bf16.mxu0 %v424_v1  ;;  %v428_v6 = vld [vmem:[%s555_s3 + $0x8] sm:$0xff]   ;;  %v430_v8 = vld [vmem:[%s555_s3] sm:$0xff]  }
   0x5   :  { %397 = vmatprep.subr.bf16.mxu1 %v428_v6  ;;  %v355_v10 = vld [vmem:[%s557_s2] ss:$0 sm:$0xff]  ;;  %v431_v21 = vld [vmem:[%s556_s7 + $0x8] sm:$0xff]  }
   0x6   :  { %398 = vmatpush3.bf16.msra.mxu1 %v428_v6  ;;  %v432_v23 = vld [vmem:[%s556_s7] sm:$0xff]  }
   0x7   :  { %392 = vmatpush3.bf16.msra.mxu0 %v424_v1  ;;  %399 = vmatprep.subr.bf16.mxu1 %v430_v8  ;;  %v367_v24 = vld [vmem:[%s558_s6] ss:$0 sm:$0xff] }
   0x8   :  { %405 = vmatprep.subr.bf16.mxu0 %v433_v5  ;;  %v362_v25 = vld [vmem:[%s559_s4] ss:$0 sm:$0xff] }
   0x9   :  { %v371_v40 = vld [vmem:[%s561_s8] ss:$0 sm:$0xff] }
   0xa   :  { %394 = vmatmul.mubr.msk.bf16.vlgmr.msra.gmra.mxu0 %vm69_vm0, %v426_v3  ;;  %400 = vmatpush3.bf16.msra.mxu1 %v430_v8 }
   0xb   :  { %406 = vmatpush3.bf16.msra.mxu0 %v427_v4  ;;  %409 = vmatprep.mubr.msk.bf16.mxu0 %vm434_vm1, %v433_v5 }
   0xc   :  { %407 = vmatprep.subr.bf16.mxu0 %v433_v5  ;;  %413 = vmatprep.subr.bf16.mxu1 %v433_v5 }
   0xf   :  { %408 = vmatpush3.bf16.msra.mxu0 %v429_v7 }
  0xca   :  { %v395_v9 = vpop.f32.mrf.mxu0 }
  0xcb   :  { %v119_v12 = vadd.f32 %v395_v9, %v355_v10 }
  0xcc   :  { %v110_v11 = vpop.f32.mrf.mxu0 }
  0xcd   :  { %v111_v14 = vadd.f32 %v355_v10, %v110_v11  ;;  %v126_v17 = vmax.f32 %v119_v12, 0.0 }
  0xce   :  { %v396_v13 = vpop.f32.mrf.mxu0 }
  0xcf   :  { %v124_v18 = vmax.f32 %v111_v14, 0.0  ;;  %v128_v22 = vpack.c.bf16 %v126_v17, %v126_v17 }
  0xd0   :  { %v113_v15 = vpop.f32.mrf.mxu0 }
  0xd1   :  { %v114_v16 = vadd.f32 %v355_v10, %v113_v15 }
  0xd3   :  { %v125_v19 = vmax.f32 %v114_v16, 0.0 }
  0xd5   :  { %v127_v20 = vpack.c.bf16 %v125_v19, %v124_v18 }
  0xd7   :  { %401 = vmatprep.mubr.msk.bf16.mxu1 %vm69_vm0, %v127_v20  ;;  %410 = vmatmul.mubr.msk.bf16.vlgmr.msra.gmra.mxu0 %vm69_vm0, %v127_v20 }
  0xd8   :  { %402 = vmatmul.mubr.msk.bf16.vlgmr.msra.gmra.mxu1 %vm69_vm0, %v128_v22 }
  0xd9   :  { %414 = vmatpush3.bf16.msra.mxu1 %v431_v21  ;;  %417 = vmatprep.mubr.msk.bf16.mxu1 %vm434_vm1, %v433_v5 }
  0xda   :  { %415 = vmatprep.subr.bf16.mxu1 %v433_v5 }
  0xdd   :  { %416 = vmatpush3.bf16.msra.mxu1 %v432_v23 }
 0x197   :  { %v271_v26 = vpop.f32.mrf.mxu0 }
 0x198   :  { %v272_v27 = vadd.f32 %v367_v24, %v271_v26  ;;  %v403_v28 = vpop.f32.mrf.mxu1 }
 0x199   :  { %v201_v29 = vadd.f32 %v403_v28, %v362_v25  ;;  %v411_v30 = vpop.f32.mrf.mxu0 }
 0x19a   :  { %v277_v31 = vmax.f32 %v272_v27, 0.0  ;;  %v192_v32 = vpop.f32.mrf.mxu1 }
 0x19b   :  { %209 = vst.msk [vmem:[%s560_s9 + $0x10] sm:$0xff] %vm206_vm2, %v201_v29  ;;  %v193_v33 = vadd.f32 %v362_v25, %v192_v32  ;;  %v274_v34 = vpop.f32.mrf.mxu0 }
 0x19c   :  { %v278_v35 = vpack.c.bf16 %v277_v31, %v277_v31  ;;  %v404_v36 = vpop.f32.mrf.mxu1 }
 0x19d   :  { %207 = vst.msk [vmem:[%s560_s9] sm:$0xff] %vm206_vm2, %v193_v33  ;;  %v412_v37 = vpop.f32.mrf.mxu0 }
 0x19e   :  { %v195_v38 = vpop.f32.mrf.mxu1  ;;  %418 = vmatmul.mubr.msk.bf16.vlgmr.msra.gmra.mxu1 %vm69_vm0, %v278_v35 }
 0x19f   :  { %v196_v39 = vadd.f32 %v362_v25, %v195_v38 }
 0x1a1   :  { %208 = vst.msk [vmem:[%s560_s9 + $0x8] sm:$0xff] %vm206_vm2, %v196_v39 }
 0x25e   :  { %v339_v41 = vpop.f32.mrf.mxu1 }
 0x25f   :  { %v340_v42 = vadd.f32 %v371_v40, %v339_v41 }
 0x260   :  { %v419_v43 = vpop.f32.mrf.mxu1 }
 0x261   :  { %346 = vst.msk [vmem:[%s562_s10] sm:$0x3] %vm345_vm3, %v340_v42 }
 0x262   :  { %v342_v44 = vpop.f32.mrf.mxu1 }
 0x264   :  { %v420_v45 = vpop.f32.mrf.mxu1 }

</bundles_post_ra>
